<compile_context>
chip_gen: v7x
topology: tpu7x:2x2x1
jax: 0.10.0
libtpu: 0.0.40
codegen_flags: <defaults>
</compile_context>

<pallas_src>
import functools

import jax
import jax.numpy as jnp
from jax.experimental import pallas as pl
from jax.experimental.pallas import tpu as pltpu


def _round_up(n, m):
    return ((n + m - 1) // m) * m


def _default_num_cores():
    # v7x has 2 TensorCores per chip; v5e/v6e have 1 (the grid is a serial
    # loop there, so splitting a small batch only adds per-step overhead).
    try:
        kind = jax.devices()[0].device_kind.lower()
    except Exception:
        return 1
    return 2 if "v7" in kind else 1


def _mlp_kernel(x_ref, w1_ref, b1_ref, w2_ref, b2_ref, w3_ref, b3_ref, o_ref,
                *, approx_sigmoid):
    mm_dtype = w1_ref.dtype  # bf16 fast path, or f32 for the exact path
    # Layer 1: Linear(input_ch -> W) + ReLU   (MXU matmul, f32 accumulation)
    h = jnp.dot(x_ref[...].astype(mm_dtype), w1_ref[...],
                preferred_element_type=jnp.float32)
    h = jnp.maximum(h + b1_ref[...], 0.0)
    # Layer 2: Linear(W -> W) + ReLU
    h = jnp.dot(h.astype(mm_dtype), w2_ref[...],
                preferred_element_type=jnp.float32)
    h = jnp.maximum(h + b2_ref[...], 0.0)
    # Output head: Linear(W -> cout_padded) + Sigmoid.
    z = jnp.dot(h.astype(mm_dtype), w3_ref[...],
                preferred_element_type=jnp.float32)
    z = z + b3_ref[...]
    # sigmoid(z) = 1 / (1 + exp(-z)): exp runs on the EUP; with approx=True the
    # reciprocal also runs on the (otherwise idle) EUP instead of the VPU.
    e = jnp.exp(-z)
    s = pl.reciprocal(1.0 + e, approx=approx_sigmoid)
    o_ref[...] = s.astype(o_ref.dtype)


def mlp_sem_finder_forward(x, params, *, block_b=1024,
                           matmul_dtype=jnp.bfloat16, out_dtype=None,
                           approx_sigmoid=None, num_cores=None,
                           vmem_limit_bytes=48 * 1024 * 1024):
    """Fused MLP forward. x: (B, input_ch) f32. Returns (B, output_ch) f32."""
    w1, b1, w2, b2, w3, b3 = params
    B, cin = x.shape
    W = w1.shape[1]
    cout = w3.shape[1]

    if num_cores is None:
        num_cores = _default_num_cores()
    if out_dtype is None:
        # bf16 output halves the (lane-padded) writeback on the fast path.
        out_dtype = jnp.bfloat16 if matmul_dtype == jnp.bfloat16 else jnp.float32
    if approx_sigmoid is None:
        approx_sigmoid = (matmul_dtype != jnp.float32)

    # --- Lane-dense output head: pad cout (e.g. 3) to a multiple of 128 so the
    # final matmul and the output store are unmasked; wrapper slices [:, :cout].
    cout_p = _round_up(max(cout, 128), 128)
    w3_p = jnp.zeros((W, cout_p), w3.dtype).at[:, :cout].set(w3)
    b3_p = jnp.zeros((1, cout_p), b3.dtype).at[:, :cout].set(b3)

    # --- Batch tiling. No wrapper-side padding: grid is cdiv-based; the ragged
    # last tile is handled by Pallas' partial-block masking. Tile rows are a
    # multiple of 16 (covers f32 and packed-bf16 sublane tiling).
    if num_cores >= 2:
        # v7x: aim for >= 4 grid steps so each TensorCore gets >= 2 iterations
        # and the double-buffered x/out pipeline overlaps DMA with compute.
        bb = max(16, min(block_b, _round_up(pl.cdiv(B, 4), 16)))
    else:
        # Single-TC chips (v5e/v6e): one big tile when B fits in block_b.
        bb = max(16, min(block_b, _round_up(B, 16)))
    grid = (pl.cdiv(B, bb),)

    # bf16 matmul operands at the call boundary; biases stay f32.
    w1c = w1.astype(matmul_dtype)
    w2c = w2.astype(matmul_dtype)
    w3c = w3_p.astype(matmul_dtype)

    def invariant(shape):
        # Whole-array block with a constant index_map: DMA'd once (Pallas only
        # re-issues the copy when the block index changes), VMEM-resident
        # across all batch tiles.
        return pl.BlockSpec(shape, lambda i: (0,) * len(shape))

    kernel = functools.partial(_mlp_kernel, approx_sigmoid=approx_sigmoid)

    out = pl.pallas_call(
        kernel,
        out_shape=jax.ShapeDtypeStruct((B, cout_p), out_dtype),
        grid_spec=pl.GridSpec(
            grid=grid,
            in_specs=[
                pl.BlockSpec((bb, cin), lambda i: (i, 0)),  # x tile
                invariant((cin, W)),      # w1
                invariant((1, W)),        # b1
                invariant((W, W)),        # w2
                invariant((1, W)),        # b2
                invariant((W, cout_p)),   # w3 (lane-padded)
                invariant((1, cout_p)),   # b3 (lane-padded)
            ],
            out_specs=pl.BlockSpec((bb, cout_p), lambda i: (i, 0)),
        ),
        compiler_params=pltpu.CompilerParams(
            dimension_semantics=("parallel",),
            vmem_limit_bytes=vmem_limit_bytes,
        ),
    )(x, w1c, b1, w2c, b2, w3c, b3_p)

    # Slice off the padded output lanes; return f32 to match the module.
    return out[:, :cout].astype(jnp.float32)


def init_params(key, input_ch, W, output_ch):
    """Deterministic init mimicking torch.nn.Linear default (U(+-1/sqrt(fan_in))).

    Weights are returned in (in_features, out_features) layout.
    """
    ks = jax.random.split(key, 6)

    def lin(kw, kb, fan_in, fan_out):
        bound = 1.0 / jnp.sqrt(jnp.float32(fan_in))
        w = jax.random.uniform(kw, (fan_in, fan_out), jnp.float32, -bound, bound)
        b = jax.random.uniform(kb, (1, fan_out), jnp.float32, -bound, bound)
        return w, b

    w1, b1 = lin(ks[0], ks[1], input_ch, W)
    w2, b2 = lin(ks[2], ks[3], W, W)
    w3, b3 = lin(ks[4], ks[5], W, output_ch)
    return (w1, b1, w2, b2, w3, b3)


def reference_forward(x, params, precision=None):
    w1, b1, w2, b2, w3, b3 = params
    h = jnp.maximum(jnp.dot(x, w1, precision=precision) + b1, 0.0)
    h = jnp.maximum(jnp.dot(h, w2, precision=precision) + b2, 0.0)
    return jax.nn.sigmoid(jnp.dot(h, w3, precision=precision) + b3)


if __name__ == "__main__":
    # Small shapes consistent with the module's structure (D=3 linears,
    # sigmoid head). B=500 is deliberately not a multiple of the tile to
    # exercise the cdiv/ragged-tile path; output_ch=3 exercises lane padding.
    B, input_ch, W, output_ch = 500, 128, 256, 3

    key = jax.random.PRNGKey(0)
    kx, kp = jax.random.split(key)
    x = jax.random.normal(kx, (B, input_ch), jnp.float32)
    params = init_params(kp, input_ch, W, output_ch)

    ref = reference_forward(x, params)
    ref_hi = reference_forward(x, params, precision=jax.lax.Precision.HIGHEST)

    # Fast path, small tile -> multi-step cdiv grid with a ragged last tile.
    out = jax.block_until_ready(mlp_sem_finder_forward(x, params, block_b=128))
    assert out.shape == (B, output_ch)
    assert jnp.allclose(out, ref, atol=3e-2), float(jnp.max(jnp.abs(out - ref)))

    # Fast path, default (large-tile, chip-aware) config.
    out = jax.block_until_ready(mlp_sem_finder_forward(x, params))
    assert out.shape == (B, output_ch)
    assert jnp.allclose(out, ref, atol=3e-2), float(jnp.max(jnp.abs(out - ref)))

    # f32 matmuls + f32 output + exact sigmoid reciprocal (tight tolerance).
    out_f32 = jax.block_until_ready(
        mlp_sem_finder_forward(x, params, matmul_dtype=jnp.float32))
    assert jnp.allclose(out_f32, ref_hi, atol=3e-3, rtol=3e-3), \
        float(jnp.max(jnp.abs(out_f32 - ref_hi)))

    print("KERNEL_OK")
</pallas_src>

<mosaic_0001>
module attributes {stable_mosaic.version = 11 : i64} {
  func.func @_mlp_kernel(%arg0: i32, %arg1: memref<128x128xf32, #tpu.memory_space<vmem>>, %arg2: memref<128x256xbf16, #tpu.memory_space<vmem>>, %arg3: memref<1x256xf32, #tpu.memory_space<vmem>>, %arg4: memref<256x256xbf16, #tpu.memory_space<vmem>>, %arg5: memref<1x256xf32, #tpu.memory_space<vmem>>, %arg6: memref<256x128xbf16, #tpu.memory_space<vmem>>, %arg7: memref<1x128xf32, #tpu.memory_space<vmem>>, %arg8: memref<128x128xbf16, #tpu.memory_space<vmem>>) attributes {dimension_semantics = [#tpu.dimension_semantics<parallel>], iteration_bounds = array<i64: 4>, scalar_prefetch = 0 : i64, scratch_operands = 0 : i64, tpu.core_type = #tpu.core_type<tc>, window_params = [{transform_indices = @transform_0, window_bounds = array<i64: 128, 128>}, {pipeline_mode = #tpu.pipeline_mode<synchronous>, transform_indices = @transform_1, window_bounds = array<i64: 128, 256>}, {pipeline_mode = #tpu.pipeline_mode<synchronous>, transform_indices = @transform_2, window_bounds = array<i64: 1, 256>}, {pipeline_mode = #tpu.pipeline_mode<synchronous>, transform_indices = @transform_3, window_bounds = array<i64: 256, 256>}, {pipeline_mode = #tpu.pipeline_mode<synchronous>, transform_indices = @transform_4, window_bounds = array<i64: 1, 256>}, {pipeline_mode = #tpu.pipeline_mode<synchronous>, transform_indices = @transform_5, window_bounds = array<i64: 256, 128>}, {pipeline_mode = #tpu.pipeline_mode<synchronous>, transform_indices = @transform_6, window_bounds = array<i64: 1, 128>}, {transform_indices = @transform_7, window_bounds = array<i64: 128, 128>}]} {
    %c0 = arith.constant 0 : index
    %c0_0 = arith.constant 0 : index
    %0 = vector.load %arg1[%c0, %c0_0] : memref<128x128xf32, #tpu.memory_space<vmem>>, vector<128x128xf32>
    %1 = arith.truncf %0 : vector<128x128xf32> to vector<128x128xbf16>
    %c0_1 = arith.constant 0 : index
    %c0_2 = arith.constant 0 : index
    %2 = vector.load %arg2[%c0_1, %c0_2] : memref<128x256xbf16, #tpu.memory_space<vmem>>, vector<128x256xbf16>
    %cst = arith.constant dense<0.000000e+00> : vector<128x256xf32>
    %3 = tpu.matmul %1, %2, %cst {dimension_numbers = #tpu.dot_dimension_numbers<[1], [0], [0], [1], [0, 0, 1, 1], [], []>} : vector<128x128xbf16>, vector<128x256xbf16>, vector<128x256xf32> -> vector<128x256xf32>
    %c0_3 = arith.constant 0 : index
    %c0_4 = arith.constant 0 : index
    %4 = vector.load %arg3[%c0_3, %c0_4] : memref<1x256xf32, #tpu.memory_space<vmem>>, vector<1x256xf32>
    %5 = vector.broadcast %4 : vector<1x256xf32> to vector<128x256xf32>
    %6 = arith.addf %3, %5 : vector<128x256xf32>
    %cst_5 = arith.constant 0.000000e+00 : f32
    %7 = vector.broadcast %cst_5 : f32 to vector<128x256xf32>
    %8 = arith.maximumf %6, %7 : vector<128x256xf32>
    %9 = arith.truncf %8 : vector<128x256xf32> to vector<128x256xbf16>
    %c0_6 = arith.constant 0 : index
    %c0_7 = arith.constant 0 : index
    %10 = vector.load %arg4[%c0_6, %c0_7] : memref<256x256xbf16, #tpu.memory_space<vmem>>, vector<256x256xbf16>
    %cst_8 = arith.constant dense<0.000000e+00> : vector<128x256xf32>
    %11 = tpu.matmul %9, %10, %cst_8 {dimension_numbers = #tpu.dot_dimension_numbers<[1], [0], [0], [1], [0, 0, 1, 1], [], []>} : vector<128x256xbf16>, vector<256x256xbf16>, vector<128x256xf32> -> vector<128x256xf32>
    %c0_9 = arith.constant 0 : index
    %c0_10 = arith.constant 0 : index
    %12 = vector.load %arg5[%c0_9, %c0_10] : memref<1x256xf32, #tpu.memory_space<vmem>>, vector<1x256xf32>
    %13 = vector.broadcast %12 : vector<1x256xf32> to vector<128x256xf32>
    %14 = arith.addf %11, %13 : vector<128x256xf32>
    %cst_11 = arith.constant 0.000000e+00 : f32
    %15 = vector.broadcast %cst_11 : f32 to vector<128x256xf32>
    %16 = arith.maximumf %14, %15 : vector<128x256xf32>
    %17 = arith.truncf %16 : vector<128x256xf32> to vector<128x256xbf16>
    %c0_12 = arith.constant 0 : index
    %c0_13 = arith.constant 0 : index
    %18 = vector.load %arg6[%c0_12, %c0_13] : memref<256x128xbf16, #tpu.memory_space<vmem>>, vector<256x128xbf16>
    %cst_14 = arith.constant dense<0.000000e+00> : vector<128x128xf32>
    %19 = tpu.matmul %17, %18, %cst_14 {dimension_numbers = #tpu.dot_dimension_numbers<[1], [0], [0], [1], [0, 0, 1, 1], [], []>} : vector<128x256xbf16>, vector<256x128xbf16>, vector<128x128xf32> -> vector<128x128xf32>
    %c0_15 = arith.constant 0 : index
    %c0_16 = arith.constant 0 : index
    %20 = vector.load %arg7[%c0_15, %c0_16] : memref<1x128xf32, #tpu.memory_space<vmem>>, vector<1x128xf32>
    %21 = vector.broadcast %20 : vector<1x128xf32> to vector<128x128xf32>
    %22 = arith.addf %19, %21 : vector<128x128xf32>
    %cst_17 = arith.constant 0.000000e+00 : f32
    %23 = vector.broadcast %cst_17 : f32 to vector<128x128xf32>
    %24 = arith.subf %23, %22 : vector<128x128xf32>
    %25 = math.exp %24 : vector<128x128xf32>
    %cst_18 = arith.constant 1.000000e+00 : f32
    %26 = vector.broadcast %cst_18 : f32 to vector<128x128xf32>
    %27 = arith.addf %26, %25 : vector<128x128xf32>
    %28 = tpu.reciprocal %27 {approx = true} : vector<128x128xf32> -> vector<128x128xf32>
    %29 = arith.truncf %28 : vector<128x128xf32> to vector<128x128xbf16>
    %c0_19 = arith.constant 0 : index
    %c0_20 = arith.constant 0 : index
    %30 = vector.load %arg8[%c0_19, %c0_20] : memref<128x128xbf16, #tpu.memory_space<vmem>>, vector<128x128xbf16>
    tpu.vector_store %arg8[%c0_19, %c0_20], %29 {strides = array<i32>} : memref<128x128xbf16, #tpu.memory_space<vmem>>, vector<128x128xbf16>,
    return
  }
  func.func @transform_0(%arg0: i32) -> (i32, i32) {
    %c0_i32 = arith.constant 0 : i32
    %c0_i32_0 = arith.constant 0 : i32
    return %arg0, %c0_i32 : i32, i32
  }
  func.func @transform_1(%arg0: i32) -> (i32, i32) {
    %c0_i32 = arith.constant 0 : i32
    %c0_i32_0 = arith.constant 0 : i32
    %c0_i32_1 = arith.constant 0 : i32
    return %c0_i32, %c0_i32_0 : i32, i32
  }
  func.func @transform_2(%arg0: i32) -> (i32, i32) {
    %c0_i32 = arith.constant 0 : i32
    %c0_i32_0 = arith.constant 0 : i32
    %c0_i32_1 = arith.constant 0 : i32
    return %c0_i32, %c0_i32_0 : i32, i32
  }
  func.func @transform_3(%arg0: i32) -> (i32, i32) {
    %c0_i32 = arith.constant 0 : i32
    %c0_i32_0 = arith.constant 0 : i32
    %c0_i32_1 = arith.constant 0 : i32
    return %c0_i32, %c0_i32_0 : i32, i32
  }
  func.func @transform_4(%arg0: i32) -> (i32, i32) {
    %c0_i32 = arith.constant 0 : i32
    %c0_i32_0 = arith.constant 0 : i32
    %c0_i32_1 = arith.constant 0 : i32
    return %c0_i32, %c0_i32_0 : i32, i32
  }
  func.func @transform_5(%arg0: i32) -> (i32, i32) {
    %c0_i32 = arith.constant 0 : i32
    %c0_i32_0 = arith.constant 0 : i32
    %c0_i32_1 = arith.constant 0 : i32
    return %c0_i32, %c0_i32_0 : i32, i32
  }
  func.func @transform_6(%arg0: i32) -> (i32, i32) {
    %c0_i32 = arith.constant 0 : i32
    %c0_i32_0 = arith.constant 0 : i32
    %c0_i32_1 = arith.constant 0 : i32
    return %c0_i32, %c0_i32_0 : i32, i32
  }
  func.func @transform_7(%arg0: i32) -> (i32, i32) {
    %c0_i32 = arith.constant 0 : i32
    %c0_i32_0 = arith.constant 0 : i32
    return %arg0, %c0_i32 : i32, i32
  }
}

</mosaic_0001>

<bundles_post_ra>
// kernel: tpu_custom_call.1
= control target key start
LH: loop header
LB: loop body
LE: loop exit
PB: predicated region body
PF: predicated region fallthrough
CT: control target
= control target key end

     0   :  { %s2694_s0 = inlined_call_operand.hbm [shape: f32[500,128], index: 0, kind: input, shape index: {}]   ;;  %s2695_s1 = inlined_call_operand.hbm [shape: bf16[128,256], index: 1, kind: input, shape index: {}]   ;;  %s2696_s2 = inlined_call_operand.vmem [shape: f32[1,256], index: 2, kind: input, shape index: {}]   ;;  %s2697_s3 = inlined_call_operand.hbm [shape: bf16[256,256], index: 3, kind: input, shape index: {}]   ;;  %s2698_s4 = inlined_call_operand.vmem [shape: f32[1,256], index: 4, kind: input, shape index: {}]   ;;  %s2699_s5 = inlined_call_operand.hbm [shape: bf16[256,128], index: 5, kind: input, shape index: {}]   ;;  %s2700_s6 = inlined_call_operand.vmem [shape: f32[1,128], index: 6, kind: input, shape index: {}]   ;;  %s2701_s7 = inlined_call_operand.hbm [shape: bf16[500,128], index: 7, kind: output, shape index: {}]  }
   0x1   :  { %2709 = sst [smem:[#allocation19_spill]] %s2695_s1 }
   0x2   :  { %12 = vsyncpa [#allocation3], 0 }
   0x3   :  { %14 = vsyncpa [#allocation3 + $0x1], 0 }
   0x4   :  { %15 = vsyncpa [#allocation6], 0 }
   0x5   :  { %16 = vsyncpa [#allocation9], 0 }
   0x6   :  { %17 = vsyncpa [#allocation4], 0 }
   0x7   :  { %19 = vsyncpa [#allocation4 + $0x1], 0  ;;  %s2257_s24 = smov 0   ;;  %s2259_s25 = smov 0  }
   0x8   :  { %s2261_s26 = smov 0   ;;  %s2263_s27 = smov 0  }
   0x9 LB: > { %2710 = sst [smem:[#allocation15_spill]] %s2189_s24  ;;  %s2278_s28 = sadd.s32 4294967295, %s2201_s27   ;;  %s2201_s27 = sphi %s2263_s27, %s2733_s27   ;;  %s2197_s26 = sphi %s2261_s26, %s2737_s26   ;;  %s2193_s25 = sphi %s2259_s25, %s2736_s25   ;;  %s2189_s24 = sphi %s2257_s24, %s2735_s24  }
   0xa   : > { %s1530_s29 = sadd.s32 4294967294, %s2201_s27   ;;  %s2282_s30 = sadd.s32 1, %s2201_s27  }
   0xb   : > { %2711 = sst [smem:[#allocation16_spill]] %s2282_s30  ;;  %s32_s8 = sadd.s32 1, %s2197_s26 }
   0xc   : > { %s29_s9 = ssub.s32 %s2201_s27, %s2282_s30  ;;  %p39_p0 = scmp.ne.s32.totalorder %s2197_s26, %s2193_s25 }
   0xd   : > { %p30_p1 = scmp.eq.s32.totalorder %s29_s9, 0  ;;  %p40_p2 = scmp.eq.s32.totalorder %s2201_s27, 0 }
   0xe   : > { %p45_p3 = scmp.ne.s32.totalorder %s2193_s25, %s2189_s24  ;;  %p2702_p4 = scmp.eq.s32.totalorder %s2278_s28, 0 }
   0xf   : > { %s2294_s10 = scalar_select %p30_p1, %s2197_s26, %s32_s8  }
  0x10   : > { %p2296_p5 = por %p40_p2, %p39_p0  ;;  %p2302_p6 = por %p2702_p4, %p45_p3 }
  0x11   : > { %2712 = sst [smem:[#allocation17_spill]] %s2294_s10  ;;  %p195_p7 = scmp.eq.s32.totalorder %s2278_s28, 3 }
  0x12   : > { %s2713_s11 = scalar_select %p2296_p5, 1, 0 }
  0x13   : > { %s2714_s12 = scalar_select %p2302_p6, 1, 0 }
  0x14   : > { %p201_p8 = scmp.eq.s32.totalorder %s1530_s29, 3  ;;  %p1531_p9 = scmp.ge.s32.totalorder %s2201_s27, 1 }
  0x15   : > { %p208_p10 = scmp.lt.s32.totalorder %s2201_s27, 5  ;;  %p2309_p11 = por %p195_p7, %p39_p0 }
  0x16   : > { %p2313_p12 = por %p201_p8, %p45_p3  ;;  %s2203_s16 = smov [#allocation5]  }
  0x17   : > { %s2715_s13 = scalar_select %p2309_p11, 1, 0 }
  0x18   : > { %s2716_s14 = scalar_select %p2313_p12, 1, 0 }
  0x19   : > { %p2317_p13 = pnand %p1531_p9, %p208_p10  ;;  %s220_s17 = sshll.u32 %s2203_s16, 4  ;;  %s221_s17 = int_to_ptr.vmem [resolvable:$true] %s220_s17 }
  0x1a   : > { %2717 = sst [smem:[#allocation18_spill]] %s2716_s14  ;;  %s2204_s19 = smov [#allocation7]  }
  0x1b   : > { %s2718_s15 = scalar_select %p2317_p13, 1, 0 }
  0x1c   : > { %p1798_p1 = pneg %p2317_p13  ;;  %s236_s20 = sshll.u32 %s2204_s19, 4  ;;  %s2329_s20 = int_to_ptr.vmem [resolvable:$true] %s236_s20 }
  0x1d   : > { %s2720_s1 = sld [smem:[#allocation19_spill]] }
  0x1e   : > { %p2325_p2 = pnand %p1798_p1, %p2702_p4 }
  0x20   : > { %p2339_p3 = pneg %p2325_p2 }
  0x23   : > { %s2015_s23 = scalar_lea.hbm %s2720_s1, 2048 }
  0x24   : > { %p2016_p0 = scmp.ne.s32.totalorder %s2720_s1, %s2015_s23  ;;  %p2022_p9 = scmp.lt.u32.totalorder %s2015_s23, %s2720_s1 }
  0x26   : > { %p2018_p7 = pnand %p2339_p3, %p2016_p0 }
  0x28   : > { %p2019_p8 = pneg %p2018_p7 }
  0x2a   : > { %p2024_p10 = pnand %p2022_p9, %p2019_p8 }
  0x2c   : > { %2027 = shalt.err (!%p2024_p10)
}
  0x2d   : > { %s2028_s21 = scalar_lea.vmem %s221_s17, 2048  ;;  %p2036_p11 = scmp.lt.s32.totalorder %s221_s17, %s221_s17 }
  0x2e   : > { %p2029_p1 = scmp.ne.s32.totalorder %s221_s17, %s2028_s21  ;;  %p2037_p6 = scmp.lt.s32.totalorder %s2028_s21, %s2028_s21 }
  0x30   : > { %p2031_p4 = pnand %p2029_p1, %p2339_p3  ;;  %p2038_p13 = por %p2037_p6, %p2036_p11 }
  0x32   : > { %p2032_p12 = pneg %p2031_p4 }
  0x34   : > { %p2039_p5 = pnand %p2038_p13, %p2032_p12 }
  0x36   : > { %2042 = shalt.err (!%p2039_p5)
}
  0x37   : > { %s2205_s22 = smov 128   ;;  %s2206_s29 = smov 8  }
  0x38   : > { %1801 = dma.hbm_to_vmem [thread:$0]  (!%p2325_p2), %s2720_s1, 2048, %s221_s17, [#allocation6], %s2205_s22, %s2205_s22, %s2206_s29  }
  0x39   : > { %s2043_s10 = scalar_lea.hbm %s2697_s3, 4096 }
  0x3a   : > { %p2044_p4 = scmp.ne.s32.totalorder %s2697_s3, %s2043_s10  ;;  %p2050_p11 = scmp.lt.u32.totalorder %s2043_s10, %s2697_s3 }
  0x3c   : > { %p2046_p6 = pnand %p2044_p4, %p2339_p3 }
  0x3e   : > { %p2047_p5 = pneg %p2046_p6 }
  0x40   : > { %p2052_p12 = pnand %p2050_p11, %p2047_p5 }
  0x42   : > { %2055 = shalt.err (!%p2052_p12)
}
  0x43   : > { %s2056_s17 = scalar_lea.vmem %s2329_s20, 4096  ;;  %p2064_p8 = scmp.lt.s32.totalorder %s2329_s20, %s2329_s20 }
  0x44   : > { %p2057_p13 = scmp.ne.s32.totalorder %s2329_s20, %s2056_s17  ;;  %p2065_p9 = scmp.lt.s32.totalorder %s2056_s17, %s2056_s17 }
  0x46   : > { %p2059_p0 = pnand %p2057_p13, %p2339_p3  ;;  %p2066_p10 = por %p2065_p9, %p2064_p8 }
  0x48   : > { %p2060_p7 = pneg %p2059_p0 }
  0x4a   : > { %p2067_p1 = pnand %p2066_p10, %p2060_p7 }
  0x4c   : > { %2070 = shalt.err (!%p2067_p1)
}
  0x4d   : > { %1804 = dma.hbm_to_vmem [thread:$0]  (!%p2325_p2), %s2697_s3, 4096, %s2329_s20, [#allocation6], %s2205_s22, %s2205_s22, %s2206_s29  }
  0x4e   : > { %s2207_s10 = smov [#allocation8]   ;;  %s2071_s16 = scalar_lea.hbm %s2699_s5, 2048 }
  0x4f   : > { %s252_s14 = sshll.u32 %s2207_s10, 4  ;;  %p2072_p4 = scmp.ne.s32.totalorder %s2699_s5, %s2071_s16  ;;  %s253_s14 = int_to_ptr.vmem [resolvable:$true] %s252_s14 }
  0x50   : > { %p2078_p11 = scmp.lt.u32.totalorder %s2071_s16, %s2699_s5 }
  0x51   : > { %p2074_p6 = pnand %p2072_p4, %p2339_p3 }
  0x53   : > { %p2075_p5 = pneg %p2074_p6 }
  0x55   : > { %p2080_p12 = pnand %p2078_p11, %p2075_p5 }
  0x57   : > { %2083 = shalt.err (!%p2080_p12)
}
  0x58   : > { %s2084_s20 = scalar_lea.vmem %s253_s14, 2048  ;;  %p2092_p8 = scmp.lt.s32.totalorder %s253_s14, %s253_s14 }
  0x59   : > { %p2085_p13 = scmp.ne.s32.totalorder %s253_s14, %s2084_s20  ;;  %p2093_p9 = scmp.lt.s32.totalorder %s2084_s20, %s2084_s20 }
  0x5b   : > { %p2087_p0 = pnand %p2085_p13, %p2339_p3  ;;  %p2094_p10 = por %p2093_p9, %p2092_p8 }
  0x5d   : > { %p2088_p7 = pneg %p2087_p0 }
  0x5f   : > { %p2095_p1 = pnand %p2094_p10, %p2088_p7 }
  0x61   : > { %2098 = shalt.err (!%p2095_p1)
}
  0x62   : > { %s2208_s22 = smov 64   ;;  %s2209_s29 = smov 4  }
  0x63   : > { %1807 = dma.hbm_to_vmem [thread:$0]  (!%p2325_p2), %s2699_s5, 2048, %s253_s14, [#allocation9], %s2208_s22, %s2208_s22, %s2209_s29  }
  0x64   : > { %p1535_p4 = scmp.ge.s32.totalorder %s2201_s27, 4 }
  0x65   : > { %p2722_p6 = scmp.ne.s32.totalorder (!%p1535_p4), %s2713_s11, 0 }
  0x66   : > { %265 = sbr.rel (%p1535_p4) target bundleno = 144 (0x90), region = 40 }
  0x6d   : > { %268 = sbr.rel (!%p2722_p6) target bundleno = 144 (0x90), region = 44  ;;  %s269_s9 = sand.u32 (%p2722_p6), 1, %s2197_s26  }
  0x6e   : > { %s1537_s30 = sshll.u32 (%p2722_p6), %s2201_s27, 4  ;;  %s1536_s10 = sshll.u32 (%p2722_p6), %s269_s9, 7 }
  0x6f   : > { %s275_s8 = ssub.s32 (%p2722_p6), 63, %s1537_s30  ;;  %s2404_s16 = scalar_lea.sflag (%p2722_p6), [#allocation3], %s269_s9 }
  0x70   : > { %p276_p3 = scmp.lt.s32.totalorder (%p2722_p6), %s275_s8, 16  ;;  %s273_s14 = scalar_lea.vmem (%p2722_p6), [#allocation2], %s1536_s10 }
  0x74   : > { %s2739_s8 = smov (!%p276_p3, %s275_s8), 16 }
  0x75   : > { %s2401_s23 = sshll.u32 %s2739_s8, 7 }
  0x76   : > { %s280_s18 = ssub.s32 2048, %s2401_s23 }
  0x77   : > { %281 = vsyncadd %s2404_s16, %s280_s18  ;;  %p1539_p2 = scmp.ne.s32.totalorder %s2401_s23, 0  ;;  %s1639_s11 = sshll.u32 %s2201_s27, 11 }
  0x78   : > { %s2412_s17 = scalar_lea.hbm %s2694_s0, %s1639_s11  ;;  %s286_s20 = sshll.u32 %s273_s14, 4  ;;  %s2414_s20 = int_to_ptr.vmem [resolvable:$true] %s286_s20 }
  0x79   : > { %s2099_s22 = scalar_lea.hbm %s2412_s17, %s2401_s23  ;;  %s2103_s1 = scalar_lea.hbm %s2694_s0, 8064 }
  0x7a   : > { %p2100_p5 = scmp.ne.s32.totalorder %s2412_s17, %s2099_s22  ;;  %p2104_p13 = scmp.lt.u32.totalorder %s2412_s17, %s2694_s0 }
  0x7b   : > { %p2105_p0 = scmp.lt.u32.totalorder %s2103_s1, %s2099_s22  ;;  %p2107_p8 = scmp.lt.u32.totalorder %s2099_s22, %s2412_s17 }
  0x7c   : > { %p2101_p11 = pnand %p2100_p5, %p1539_p2 }
  0x7d   : > { %p2106_p7 = por %p2105_p0, %p2104_p13 }
  0x7e   : > { %p2102_p12 = pneg %p2101_p11 }
  0x7f   : > { %p2108_p9 = por %p2107_p8, %p2106_p7 }
  0x81   : > { %p2109_p10 = pnand %p2108_p9, %p2102_p12 }
  0x83   : > { %2112 = shalt.err (!%p2109_p10)
}
  0x84   : > { %s2113_s10 = scalar_lea.vmem %s2414_s20, %s2401_s23  ;;  %s2210_s8 = smov [#allocation2]  }
  0x85   : > { %p2114_p1 = scmp.ne.s32.totalorder %s2414_s20, %s2113_s10  ;;  %s2117_s18 = sshll.u32 %s2210_s8, 4  ;;  %s2118_s18 = int_to_ptr.vmem [resolvable:$false] %s2117_s18 }
  0x86   : > { %s2119_s14 = scalar_lea.vmem %s2118_s18, 4096  ;;  %p2120_p3 = scmp.lt.s32.totalorder %s2414_s20, %s2118_s18 }
  0x87   : > { %p2115_p4 = pnand %p2114_p1, %p1539_p2  ;;  %p2121_p5 = scmp.lt.s32.totalorder %s2119_s14, %s2113_s10 }
  0x89   : > { %p2116_p6 = pneg %p2115_p4  ;;  %p2122_p11 = por %p2121_p5, %p2120_p3 }
  0x8b   : > { %p2123_p13 = pnand %p2122_p11, %p2116_p6 }
  0x8d   : > { %2126 = shalt.err (!%p2123_p13)
}
  0x8e   : > { %s2211_s11 = smov 128   ;;  %s2212_s19 = smov 8  }
  0x8f   : > { %292 = dma.hbm_to_vmem [thread:$0]  (%p1539_p2), %s2412_s17, %s2401_s23, %s2414_s20, %s2404_s16, %s2211_s11, %s2211_s11, %s2212_s19  }
  0x90 PF: > { %p2723_p12 = scmp.ne.s32.totalorder %s2718_s15, 0 }
  0x91   : > { %s2444_s21 = sand.u32 (!%p2723_p12), 1, %s2193_s25   ;;  %p2724_p0 = scmp.ne.s32.totalorder (!%p2723_p12), %s2714_s12, 0 }
  0x92   : > { %298 = sbr.rel (%p2723_p12) target bundleno = 971 (0x3cb), region = 48  ;;  %s1544_s22 = sshll.u32 (!%p2723_p12), %s2444_s21, 7 }
  0x93   : > { %s301_s29 = scalar_lea.sflag (!%p2723_p12), [#allocation3], %s2444_s21  ;;  %s2448_s24 = scalar_lea.vmem (!%p2723_p12), [#allocation2], %s1544_s22 }
  0x99   : > { %2172 = dma.done.wait (%p2724_p0), %s301_s29, 2048  }
  0x9a   : > { %2174 = vsyncadd (%p2724_p0), %s301_s29, 4294965248  ;;  %p2725_p2 = scmp.eq.s32.totalorder %s2278_s28, 0 }
  0x9c   : > { %2176 = dma.done.wait (%p2725_p2), [#allocation6], 6144   ;;  %p2726_p7 = pmov %p2725_p2 }
  0x9d   : > { %p2727_p8 = pmov %p2725_p2 }
  0x9e   : > { %2178 = vsyncadd (%p2726_p7), [#allocation6], 4294961152 }
  0x9f   : > { %2180 = dma.done.wait (%p2727_p8), [#allocation9], 2048   ;;  %p2728_p9 = pmov %p2725_p2 }
  0xa0   : > { %v2213_v0 = vmov 0   ;;  %v1863_v1 = vld [vmem:[#allocation5 + $0x4] ss:$8 sps:$4 sm:$0xff]   ;;  %v1865_v2 = vld [vmem:[#allocation5] ss:$8 sps:$4 sm:$0xff]   ;;  %v360_v31 = vld [vmem:[%s2448_s24 + $0x10] sm:$0xff] }
  0xa1   : > { %2182 = vsyncadd (%p2728_p9), [#allocation9], 4294965248  ;;  %522 = vmatprep.mubr.bf16.mxu0 %v2213_v0  ;;  %490 = vmatprep.subr.bf16.mxu0 %v1863_v1  ;;  %v1866_v3 = vld [vmem:[#allocation5 + $0x14] ss:$8 sps:$4 sm:$0xff]   ;;  %v1868_v4 = vld [vmem:[#allocation5 + $0x10] ss:$8 sps:$4 sm:$0xff]  }
  0xa2   : > { %491 = vmatpush1.bf16.msra.mxu0 %v1865_v2  ;;  %v1869_v5 = vld [vmem:[#allocation5 + $0x24] ss:$8 sps:$4 sm:$0xff]   ;;  %v1871_v6 = vld [vmem:[#allocation5 + $0x20] ss:$8 sps:$4 sm:$0xff]   ;;  %v1872_v7 = vld [vmem:[#allocation5 + $0x34] ss:$8 sps:$4 sm:$0xff]  }
  0xa3   : > { %492 = vmatprep.subr.bf16.mxu0 %v1866_v3  ;;  %v1874_v8 = vld [vmem:[#allocation5 + $0x30] ss:$8 sps:$4 sm:$0xff]   ;;  %v1875_v9 = vld [vmem:[#allocation5 + $0x44] ss:$8 sps:$4 sm:$0xff]   ;;  %v1877_v10 = vld [vmem:[#allocation5 + $0x40] ss:$8 sps:$4 sm:$0xff]  }
  0xa4   : > { %v1878_v11 = vld [vmem:[#allocation5 + $0x54] ss:$8 sps:$4 sm:$0xff]   ;;  %v1887_v12 = vld [vmem:[#allocation7 + $0x4] ss:$8 sps:$4 sm:$0xff]   ;;  %v1889_v13 = vld [vmem:[#allocation7] ss:$8 sps:$4 sm:$0xff]  }
  0xa5   : > { %v1880_v14 = vld [vmem:[#allocation5 + $0x50] ss:$8 sps:$4 sm:$0xff]   ;;  %855 = vmatprep.subr.bf16.mxu1 %v1887_v12  ;;  %v1890_v15 = vld [vmem:[#allocation7 + $0x14] ss:$8 sps:$4 sm:$0xff]   ;;  %v1881_v16 = vld [vmem:[#allocation5 + $0x64] ss:$8 sps:$4 sm:$0xff]  }
  0xa6   : > { %493 = vmatpush1.bf16.msra.mxu0 %v1868_v4  ;;  %856 = vmatpush1.bf16.msra.mxu1 %v1889_v13  ;;  %v1892_v17 = vld [vmem:[#allocation7 + $0x10] ss:$8 sps:$4 sm:$0xff]   ;;  %v1893_v18 = vld [vmem:[#allocation7 + $0x24] ss:$8 sps:$4 sm:$0xff]   ;;  %v1883_v19 = vld [vmem:[#allocation5 + $0x60] ss:$8 sps:$4 sm:$0xff]  }
  0xa7   : > { %494 = vmatprep.subr.bf16.mxu0 %v1869_v5  ;;  %857 = vmatprep.subr.bf16.mxu1 %v1890_v15  ;;  %v1884_v20 = vld [vmem:[#allocation5 + $0x74] ss:$8 sps:$4 sm:$0xff]   ;;  %v1895_v21 = vld [vmem:[#allocation7 + $0x20] ss:$8 sps:$4 sm:$0xff]   ;;  %v1886_v23 = vld [vmem:[#allocation5 + $0x70] ss:$8 sps:$4 sm:$0xff]  }
  0xa8   : > { %v1896_v22 = vld [vmem:[#allocation7 + $0x34] ss:$8 sps:$4 sm:$0xff]   ;;  %v358_v24 = vld [vmem:[%s2448_s24] sm:$0xff]  ;;  %v359_v25 = vld [vmem:[%s2448_s24 + $0x8] sm:$0xff]  ;;  %s1548_s1 = sshll.u32 %s2444_s21, 6  ;;  %s1409_s30 = scalar_lea.sflag [#allocation4], %s2444_s21 }
  0xa9   : > { %v1898_v26 = vld [vmem:[#allocation7 + $0x30] ss:$8 sps:$4 sm:$0xff]   ;;  %v1899_v27 = vld [vmem:[#allocation7 + $0x44] ss:$8 sps:$4 sm:$0xff]   ;;  %v374_v28 = vpack.c.bf16 %v359_v25, %v358_v24  ;;  %v1901_v29 = vld [vmem:[#allocation7 + $0x40] ss:$8 sps:$4 sm:$0xff]  }
  0xaa   : > { %495 = vmatpush1.bf16.msra.mxu0 %v1871_v6  ;;  %858 = vmatpush1.bf16.msra.mxu1 %v1892_v17  ;;  %v1902_v30 = vld [vmem:[#allocation7 + $0x54] ss:$8 sps:$4 sm:$0xff]   ;;  %v1904_v33 = vld [vmem:[#allocation7 + $0x50] ss:$8 sps:$4 sm:$0xff]   ;;  %v1905_v34 = vld [vmem:[#allocation7 + $0x64] ss:$8 sps:$4 sm:$0xff]  }
  0xab   : > { %496 = vmatprep.subr.bf16.mxu0 %v1872_v7  ;;  %859 = vmatprep.subr.bf16.mxu1 %v1893_v18  ;;  %v361_v32 = vld [vmem:[%s2448_s24 + $0x18] sm:$0xff]  ;;  %v1907_v35 = vld [vmem:[#allocation7 + $0x60] ss:$8 sps:$4 sm:$0xff]   ;;  %v1911_v41 = vld [vmem:[#allocation7 + $0x84] ss:$8 sps:$4 sm:$0xff]   ;;  %s2615_s9 = scalar_lea.vmem [#allocation10], %s1548_s1 }
  0xac   : > { %v375_v36 = vpack.c.bf16 %v361_v32, %v360_v31  ;;  %v1908_v37 = vld [vmem:[#allocation7 + $0x74] ss:$8 sps:$4 sm:$0xff]   ;;  %v362_v38 = vld [vmem:[%s2448_s24 + $0x20] sm:$0xff]  ;;  %v363_v39 = vld [vmem:[%s2448_s24 + $0x28] sm:$0xff]  ;;  %p2729_p10 = scmp.ne.s32.totalorder %s2715_s13, 0 }
  0xad   : > { %v1910_v40 = vld [vmem:[#allocation7 + $0x70] ss:$8 sps:$4 sm:$0xff]   ;;  %v376_v42 = vpack.c.bf16 %v363_v39, %v362_v38  ;;  %v1913_v43 = vld [vmem:[#allocation7 + $0x80] ss:$8 sps:$4 sm:$0xff]   ;;  %v1914_v44 = vld [vmem:[#allocation7 + $0x94] ss:$8 sps:$4 sm:$0xff]  }
  0xae   : > { %497 = vmatpush1.bf16.msra.mxu0 %v1874_v8  ;;  %860 = vmatpush1.bf16.msra.mxu1 %v1895_v21  ;;  %v364_v45 = vld [vmem:[%s2448_s24 + $0x30] sm:$0xff]  ;;  %v365_v46 = vld [vmem:[%s2448_s24 + $0x38] sm:$0xff]  ;;  %v1917_v48 = vld [vmem:[#allocation7 + $0xa4] ss:$8 sps:$4 sm:$0xff]   ;;  %s1631_s10 = sshll.u32 (%p2729_p10), %s2278_s28, 4 }
  0xaf   : > { %498 = vmatprep.subr.bf16.mxu0 %v1875_v9  ;;  %861 = vmatprep.subr.bf16.mxu1 %v1896_v22  ;;  %v1916_v47 = vld [vmem:[#allocation7 + $0x90] ss:$8 sps:$4 sm:$0xff]   ;;  %v377_v49 = vpack.c.bf16 %v365_v46, %v364_v45  ;;  %v1919_v50 = vld [vmem:[#allocation7 + $0xa0] ss:$8 sps:$4 sm:$0xff]   ;;  %v1920_v51 = vld [vmem:[#allocation7 + $0xb4] ss:$8 sps:$4 sm:$0xff]  }
  0xb0   : > { %v366_v52 = vld [vmem:[%s2448_s24 + $0x40] sm:$0xff]  ;;  %v367_v53 = vld [vmem:[%s2448_s24 + $0x48] sm:$0xff]  ;;  %v1922_v54 = vld [vmem:[#allocation7 + $0xb0] ss:$8 sps:$4 sm:$0xff]   ;;  %s1417_s8 = ssub.s32 (%p2729_p10), 63, %s1631_s10 }
  0xb1   : > { %v1923_v55 = vld [vmem:[#allocation7 + $0xc4] ss:$8 sps:$4 sm:$0xff]   ;;  %v378_v56 = vpack.c.bf16 %v367_v53, %v366_v52  ;;  %v1925_v57 = vld [vmem:[#allocation7 + $0xc0] ss:$8 sps:$4 sm:$0xff]   ;;  %v1926_v58 = vld [vmem:[#allocation7 + $0xd4] ss:$8 sps:$4 sm:$0xff]  }
  0xb2   : > { %499 = vmatpush1.bf16.msra.mxu0 %v1877_v10  ;;  %862 = vmatpush1.bf16.msra.mxu1 %v1898_v26  ;;  %v368_v59 = vld [vmem:[%s2448_s24 + $0x50] sm:$0xff]  ;;  %v369_v60 = vld [vmem:[%s2448_s24 + $0x58] sm:$0xff]  ;;  %v370_v62 = vld [vmem:[%s2448_s24 + $0x60] sm:$0xff]  ;;  %p1418_p1 = scmp.lt.s32.totalorder (%p2729_p10), %s1417_s8, 16 }
  0xb3   : > { %500 = vmatprep.subr.bf16.mxu0 %v1878_v11  ;;  %863 = vmatprep.subr.bf16.mxu1 %v1899_v27  ;;  %v379_v61 = vpack.c.bf16 %v369_v60, %v368_v59  ;;  %v371_v63 = vld [vmem:[%s2448_s24 + $0x68] sm:$0xff]  ;;  %v372_v2 = vld [vmem:[%s2448_s24 + $0x70] sm:$0xff]  ;;  %v373_v3 = vld [vmem:[%s2448_s24 + $0x78] sm:$0xff] }
  0xb4   : > { %v380_v1 = vpack.c.bf16 %v371_v63, %v370_v62  ;;  %v381_v4 = vpack.c.bf16 %v373_v3, %v372_v2  ;;  %v1928_v5 = vld [vmem:[#allocation7 + $0xd0] ss:$8 sps:$4 sm:$0xff]   ;;  %v1929_v6 = vld [vmem:[#allocation7 + $0xe4] ss:$8 sps:$4 sm:$0xff]   ;;  %v1931_v7 = vld [vmem:[#allocation7 + $0xe0] ss:$8 sps:$4 sm:$0xff]  }
  0xb5   : > { %v1932_v8 = vld [vmem:[#allocation7 + $0xf4] ss:$8 sps:$4 sm:$0xff]   ;;  %v1934_v9 = vld [vmem:[#allocation7 + $0xf0] ss:$8 sps:$4 sm:$0xff]   ;;  %v1935_v10 = vld [vmem:[#allocation8 + $0x40] sm:$0xff]  }
  0xb6   : > { %501 = vmatpush1.bf16.msra.mxu0 %v1880_v14  ;;  %864 = vmatpush1.bf16.msra.mxu1 %v1901_v29  ;;  %v1936_v11 = vld [vmem:[#allocation8] sm:$0xff]   ;;  %v1937_v12 = vld [vmem:[#allocation8 + $0x48] sm:$0xff]   ;;  %v1939_v13 = vld [vmem:[#allocation8 + $0x50] sm:$0xff]  }
  0xb7   : > { %502 = vmatprep.subr.bf16.mxu0 %v1881_v16  ;;  %865 = vmatprep.subr.bf16.mxu1 %v1902_v30  ;;  %v2486_v14 = vld [vmem:[#allocation8 + $0x10] sm:$0xff]   ;;  %v2488_v15 = vld [vmem:[#allocation8 + $0x58] sm:$0xff]   ;;  %v2494_v17 = vld [vmem:[#allocation8 + $0x60] sm:$0xff]  }
  0xb8   : > { %v2491_v16 = vld [vmem:[#allocation8 + $0x18] sm:$0xff]   ;;  %v2497_v18 = vld [vmem:[#allocation8 + $0x20] sm:$0xff]  }
  0xba   : > { %503 = vmatpush1.bf16.msra.mxu0 %v1883_v19  ;;  %866 = vmatpush1.bf16.msra.mxu1 %v1904_v33  ;;  %v2500_v19 = vld [vmem:[#allocation8 + $0x68] sm:$0xff]  }
  0xbb   : > { %504 = vmatprep.subr.bf16.mxu0 %v1884_v20  ;;  %867 = vmatprep.subr.bf16.mxu1 %v1905_v34  ;;  %v400_v20 = vlaneseq }
  0xbd   : > { %v2504_v21 = vshrl.u32 %v400_v20, 7 }
  0xbe   : > { %505 = vmatpush1.bf16.msra.mxu0 %v1886_v23  ;;  %868 = vmatpush1.bf16.msra.mxu1 %v1907_v35  ;;  %v398_v23 = vld [vmem:[%s2696_s2] sm:$0x3] }
  0xbf   : > { %869 = vmatprep.subr.bf16.mxu1 %v1908_v37  ;;  %1704 = vmatprep.subr.bf16.mxu0 %v1935_v10  ;;  %v402_v22 = vsub.s32 0, %v2504_v21  ;;  %v406_v24 = vsub.s32 1, %v2504_v21 }
  0xc1   : > { %523 = vmatmul.mubr.bf16.vlgmr.msra.gmra.mrb[0].mxu0 %v374_v28  ;;  %v2513_v25 = vrot.slane %v398_v23, %v402_v22  ;;  %v2517_v26 = vrot.slane %v398_v23, %v406_v24 }
  0xc2   : > { %532 = vmatprep.mubr.bf16.mxu0 %v2213_v0  ;;  %870 = vmatpush1.bf16.msra.mxu1 %v1910_v40 }
  0xc3   : > { %871 = vmatprep.subr.bf16.mxu1 %v1911_v41  ;;  %1705 = vmatpush3.bf16.msra.mxu0 %v1936_v11 }
  0xc4   : > { %1706 = vmatprep.subr.bf16.mxu0 %v1937_v12 }
  0xc6   : > { %872 = vmatpush1.bf16.msra.mxu1 %v1913_v43 }
  0xc7   : > { %873 = vmatprep.subr.bf16.mxu1 %v1914_v44 }
  0xc9   : > { %533 = vmatmul.mubr.bf16.gmra.mrb[4].mxu0 %v375_v36 }
  0xca   : > { %542 = vmatprep.mubr.bf16.mxu0 %v2213_v0  ;;  %874 = vmatpush1.bf16.msra.mxu1 %v1916_v47 }
  0xcb   : > { %875 = vmatprep.subr.bf16.mxu1 %v1917_v48 }
  0xce   : > { %876 = vmatpush1.bf16.msra.mxu1 %v1919_v50 }
  0xcf   : > { %877 = vmatprep.subr.bf16.mxu1 %v1920_v51 }
  0xd1   : > { %543 = vmatmul.mubr.bf16.gmra.mrb[8].mxu0 %v376_v42 }
  0xd2   : > { %552 = vmatprep.mubr.bf16.mxu0 %v2213_v0  ;;  %878 = vmatpush1.bf16.msra.mxu1 %v1922_v54 }
  0xd3   : > { %879 = vmatprep.subr.bf16.mxu1 %v1923_v55 }
  0xd6   : > { %880 = vmatpush1.bf16.msra.mxu1 %v1925_v57 }
  0xd7   : > { %881 = vmatprep.subr.bf16.mxu1 %v1926_v58 }
  0xd9   : > { %553 = vmatmul.mubr.bf16.gmra.mrb[12].mxu0 %v377_v49 }
  0xda   : > { %562 = vmatprep.mubr.bf16.mxu0 %v2213_v0  ;;  %882 = vmatpush1.bf16.msra.mxu1 %v1928_v5 }
  0xdb   : > { %883 = vmatprep.subr.bf16.mxu1 %v1929_v6 }
  0xde   : > { %884 = vmatpush1.bf16.msra.mxu1 %v1931_v7 }
  0xdf   : > { %885 = vmatprep.subr.bf16.mxu1 %v1932_v8 }
  0xe1   : > { %563 = vmatmul.mubr.bf16.gmra.mrb[16].mxu0 %v378_v56 }
  0xe2   : > { %572 = vmatprep.mubr.bf16.mxu0 %v2213_v0  ;;  %886 = vmatpush1.bf16.msra.mxu1 %v1934_v9 }
  0xe3   : > { %1768 = vmatprep.subr.bf16.mxu1 %v1935_v10 }
  0xe9   : > { %573 = vmatmul.mubr.bf16.gmra.mrb[20].mxu0 %v379_v61 }
  0xea   : > { %582 = vmatprep.mubr.bf16.mxu0 %v2213_v0 }
  0xf1   : > { %583 = vmatmul.mubr.bf16.gmra.mrb[24].mxu0 %v380_v1 }
  0xf2   : > { %592 = vmatprep.mubr.bf16.mxu0 %v2213_v0  ;;  %v1938_v0 = vld [vmem:[#allocation8 + $0x8] sm:$0xff]  }
  0xf3   : > { %1707 = vmatpush3.bf16.msra.mxu0 %v1938_v0 }
  0xf4   : > { %1708 = vmatprep.subr.bf16.mxu0 %v1939_v13 }
  0xf7   : > { %1709 = vmatpush3.bf16.msra.mxu0 %v2486_v14 }
  0xf8   : > { %1710 = vmatprep.subr.bf16.mxu0 %v2488_v15 }
  0xf9   : > { %593 = vmatmul.mubr.bf16.gmra.mrb[28].mxu0 %v381_v4 }
  0xfb   : > { %1711 = vmatpush3.bf16.msra.mxu0 %v2491_v16 }
  0xfc   : > { %1712 = vmatprep.subr.bf16.mxu0 %v2494_v17 }
  0xff   : > { %1713 = vmatpush3.bf16.msra.mxu0 %v2497_v18 }
 0x100   : > { %1714 = vmatprep.subr.bf16.mxu0 %v2500_v19 }
 0x194   : > { %v524_v27 = vpop.f32.mrb[0].mxu0 }
 0x195   : > { %v525_v28 = vadd.f32 %v524_v27, %v2513_v25  ;;  %v526_v29 = vpop.f32.mrb[1].mxu0 }
 0x196   : > { %v527_v30 = vadd.f32 %v526_v29, %v2517_v26  ;;  %v528_v31 = vpop.f32.mrb[2].mxu0 }
 0x197   : > { %v529_v32 = vadd.f32 %v528_v31, %v2513_v25  ;;  %v530_v33 = vpop.f32.mrb[3].mxu0  ;;  %v603_v35 = vmax.f32 %v525_v28, 0.0 }
 0x198   : > { %v531_v34 = vadd.f32 %v530_v33, %v2517_v26  ;;  %v604_v37 = vmax.f32 %v527_v30, 0.0 }
 0x199   : > { %v605_v36 = vmax.f32 %v529_v32, 0.0 }
 0x19a   : > { %v606_v38 = vmax.f32 %v531_v34, 0.0 }
 0x19b   : > { %v635_v39 = vpack.c.bf16 %v605_v36, %v603_v35 }
 0x19c   : > { %v534_v40 = vpop.f32.mrb[4].mxu0  ;;  %v636_v41 = vpack.c.bf16 %v606_v38, %v604_v37 }
 0x19d   : > { %v535_v42 = vadd.f32 %v534_v40, %v2513_v25  ;;  %v536_v43 = vpop.f32.mrb[5].mxu0 }
 0x19e   : > { %v537_v44 = vadd.f32 %v536_v43, %v2517_v26  ;;  %v538_v45 = vpop.f32.mrb[6].mxu0  ;;  %887 = vmatprep.mubr.bf16.mxu1 %v636_v41 }
 0x19f   : > { %v539_v46 = vadd.f32 %v538_v45, %v2513_v25  ;;  %v540_v47 = vpop.f32.mrb[7].mxu0  ;;  %888 = vmatmul.mubr.bf16.vlgmr.msra.gmra.mrb[0].mxu1 %v635_v39  ;;  %v607_v49 = vmax.f32 %v535_v42, 0.0 }
 0x1a0   : > { %v541_v48 = vadd.f32 %v540_v47, %v2517_v26  ;;  %1776 = vmatpush3.bf16.msra.mxu1 %v1936_v11  ;;  %v608_v51 = vmax.f32 %v537_v44, 0.0 }
 0x1a1   : > { %v609_v50 = vmax.f32 %v539_v46, 0.0  ;;  %1769 = vmatprep.subr.bf16.mxu1 %v1937_v12 }
 0x1a2   : > { %v610_v52 = vmax.f32 %v541_v48, 0.0 }
 0x1a3   : > { %v637_v53 = vpack.c.bf16 %v609_v50, %v607_v49 }
 0x1a4   : > { %v638_v54 = vpack.c.bf16 %v610_v52, %v608_v51  ;;  %v544_v55 = vpop.f32.mrb[8].mxu0  ;;  %1777 = vmatpush3.bf16.msra.mxu1 %v1938_v0 }
 0x1a5   : > { %v545_v56 = vadd.f32 %v544_v55, %v2513_v25  ;;  %v546_v57 = vpop.f32.mrb[9].mxu0  ;;  %1770 = vmatprep.subr.bf16.mxu1 %v1939_v13 }
 0x1a6   : > { %v547_v58 = vadd.f32 %v546_v57, %v2517_v26  ;;  %v548_v59 = vpop.f32.mrb[10].mxu0  ;;  %897 = vmatprep.mubr.bf16.mxu1 %v638_v54 }
 0x1a7   : > { %v549_v60 = vadd.f32 %v548_v59, %v2513_v25  ;;  %v550_v61 = vpop.f32.mrb[11].mxu0  ;;  %898 = vmatmul.mubr.bf16.gmra.mrb[4].mxu1 %v637_v53  ;;  %v611_v63 = vmax.f32 %v545_v56, 0.0 }
 0x1a8   : > { %v551_v62 = vadd.f32 %v550_v61, %v2517_v26  ;;  %1778 = vmatpush3.bf16.msra.mxu1 %v2486_v14  ;;  %v612_v2 = vmax.f32 %v547_v58, 0.0 }
 0x1a9   : > { %v613_v1 = vmax.f32 %v549_v60, 0.0  ;;  %1771 = vmatprep.subr.bf16.mxu1 %v2488_v15 }
 0x1aa   : > { %v614_v3 = vmax.f32 %v551_v62, 0.0 }
 0x1ab   : > { %v639_v4 = vpack.c.bf16 %v613_v1, %v611_v63 }
 0x1ac   : > { %v640_v5 = vpack.c.bf16 %v614_v3, %v612_v2  ;;  %v554_v6 = vpop.f32.mrb[12].mxu0  ;;  %1779 = vmatpush3.bf16.msra.mxu1 %v2491_v16 }
 0x1ad   : > { %v555_v7 = vadd.f32 %v554_v6, %v2513_v25  ;;  %v556_v8 = vpop.f32.mrb[13].mxu0  ;;  %1772 = vmatprep.subr.bf16.mxu1 %v2494_v17 }
 0x1ae   : > { %v557_v9 = vadd.f32 %v556_v8, %v2517_v26  ;;  %v558_v10 = vpop.f32.mrb[14].mxu0  ;;  %907 = vmatprep.mubr.bf16.mxu1 %v640_v5 }
 0x1af   : > { %v559_v11 = vadd.f32 %v558_v10, %v2513_v25  ;;  %v560_v12 = vpop.f32.mrb[15].mxu0  ;;  %908 = vmatmul.mubr.bf16.gmra.mrb[8].mxu1 %v639_v4  ;;  %v615_v13 = vmax.f32 %v555_v7, 0.0 }
 0x1b0   : > { %v561_v0 = vadd.f32 %v560_v12, %v2517_v26  ;;  %1780 = vmatpush3.bf16.msra.mxu1 %v2497_v18  ;;  %v616_v15 = vmax.f32 %v557_v9, 0.0 }
 0x1b1   : > { %v617_v14 = vmax.f32 %v559_v11, 0.0  ;;  %1773 = vmatprep.subr.bf16.mxu1 %v2500_v19 }
 0x1b2   : > { %v618_v16 = vmax.f32 %v561_v0, 0.0 }
 0x1b3   : > { %v641_v20 = vpack.c.bf16 %v617_v14, %v615_v13 }
 0x1b4   : > { %v642_v17 = vpack.c.bf16 %v618_v16, %v616_v15  ;;  %v564_v23 = vpop.f32.mrb[16].mxu0  ;;  %v1946_v16 = vld [vmem:[#allocation8 + $0x28] sm:$0xff]  }
 0x1b5   : > { %v565_v27 = vadd.f32 %v564_v23, %v2513_v25  ;;  %v566_v28 = vpop.f32.mrb[17].mxu0  ;;  %1715 = vmatpush3.bf16.msra.mxu0 %v1946_v16  ;;  %1781 = vmatpush3.bf16.msra.mxu1 %v1946_v16  ;;  %v1950_v23 = vld [vmem:[#allocation8 + $0x38] sm:$0xff]  }
 0x1b6   : > { %v567_v29 = vadd.f32 %v566_v28, %v2517_v26  ;;  %v568_v30 = vpop.f32.mrb[18].mxu0  ;;  %917 = vmatprep.mubr.bf16.mxu1 %v642_v17  ;;  %v1948_v17 = vld [vmem:[#allocation8 + $0x30] sm:$0xff]  }
 0x1b7   : > { %v569_v31 = vadd.f32 %v568_v30, %v2513_v25  ;;  %v570_v32 = vpop.f32.mrb[19].mxu0  ;;  %918 = vmatmul.mubr.bf16.gmra.mrb[12].mxu1 %v641_v20  ;;  %v619_v33 = vmax.f32 %v565_v27, 0.0  ;;  %v1947_v20 = vld [vmem:[#allocation8 + $0x70] sm:$0xff]  }
 0x1b8   : > { %v571_v18 = vadd.f32 %v570_v32, %v2517_v26  ;;  %v620_v34 = vmax.f32 %v567_v29, 0.0  ;;  %1716 = vmatprep.subr.bf16.mxu0 %v1947_v20  ;;  %1774 = vmatprep.subr.bf16.mxu1 %v1947_v20 }
 0x1b9   : > { %v621_v19 = vmax.f32 %v569_v31, 0.0  ;;  %1717 = vmatpush3.bf16.msra.mxu0 %v1948_v17  ;;  %1782 = vmatpush3.bf16.msra.mxu1 %v1948_v17 }
 0x1ba   : > { %v622_v35 = vmax.f32 %v571_v18, 0.0 }
 0x1bb   : > { %v643_v36 = vpack.c.bf16 %v621_v19, %v619_v33 }
 0x1bc   : > { %v644_v37 = vpack.c.bf16 %v622_v35, %v620_v34  ;;  %v574_v38 = vpop.f32.mrb[20].mxu0 }
 0x1bd   : > { %v575_v39 = vadd.f32 %v574_v38, %v2513_v25  ;;  %v576_v40 = vpop.f32.mrb[21].mxu0 }
 0x1be   : > { %v577_v41 = vadd.f32 %v576_v40, %v2517_v26  ;;  %v578_v42 = vpop.f32.mrb[22].mxu0  ;;  %927 = vmatprep.mubr.bf16.mxu1 %v644_v37 }
 0x1bf   : > { %v579_v43 = vadd.f32 %v578_v42, %v2513_v25  ;;  %v580_v44 = vpop.f32.mrb[23].mxu0  ;;  %928 = vmatmul.mubr.bf16.gmra.mrb[16].mxu1 %v643_v36  ;;  %v623_v46 = vmax.f32 %v575_v39, 0.0 }
 0x1c0   : > { %v581_v45 = vadd.f32 %v580_v44, %v2517_v26  ;;  %v624_v48 = vmax.f32 %v577_v41, 0.0 }
 0x1c1   : > { %v625_v47 = vmax.f32 %v579_v43, 0.0 }
 0x1c2   : > { %v626_v49 = vmax.f32 %v581_v45, 0.0 }
 0x1c3   : > { %v645_v50 = vpack.c.bf16 %v625_v47, %v623_v46 }
 0x1c4   : > { %v646_v51 = vpack.c.bf16 %v626_v49, %v624_v48  ;;  %v584_v52 = vpop.f32.mrb[24].mxu0 }
 0x1c5   : > { %v585_v53 = vadd.f32 %v584_v52, %v2513_v25  ;;  %v586_v54 = vpop.f32.mrb[25].mxu0 }
 0x1c6   : > { %v587_v55 = vadd.f32 %v586_v54, %v2517_v26  ;;  %v588_v56 = vpop.f32.mrb[26].mxu0  ;;  %937 = vmatprep.mubr.bf16.mxu1 %v646_v51 }
 0x1c7   : > { %v589_v57 = vadd.f32 %v588_v56, %v2513_v25  ;;  %v590_v58 = vpop.f32.mrb[27].mxu0  ;;  %938 = vmatmul.mubr.bf16.gmra.mrb[20].mxu1 %v645_v50  ;;  %v627_v60 = vmax.f32 %v585_v53, 0.0 }
 0x1c8   : > { %v591_v59 = vadd.f32 %v590_v58, %v2517_v26  ;;  %v628_v62 = vmax.f32 %v587_v55, 0.0 }
 0x1c9   : > { %v629_v61 = vmax.f32 %v589_v57, 0.0 }
 0x1ca   : > { %v630_v63 = vmax.f32 %v591_v59, 0.0 }
 0x1cb   : > { %v647_v1 = vpack.c.bf16 %v629_v61, %v627_v60 }
 0x1cc   : > { %v648_v2 = vpack.c.bf16 %v630_v63, %v628_v62  ;;  %v594_v3 = vpop.f32.mrb[28].mxu0 }
 0x1cd   : > { %v595_v4 = vadd.f32 %v594_v3, %v2513_v25  ;;  %v596_v5 = vpop.f32.mrb[29].mxu0 }
 0x1ce   : > { %v597_v6 = vadd.f32 %v596_v5, %v2517_v26  ;;  %v598_v7 = vpop.f32.mrb[30].mxu0  ;;  %947 = vmatprep.mubr.bf16.mxu1 %v648_v2 }
 0x1cf   : > { %v599_v8 = vadd.f32 %v598_v7, %v2513_v25  ;;  %v600_v9 = vpop.f32.mrb[31].mxu0  ;;  %948 = vmatmul.mubr.bf16.gmra.mrb[24].mxu1 %v647_v1  ;;  %v631_v11 = vmax.f32 %v595_v4, 0.0  ;;  %v1949_v25 = vld [vmem:[#allocation8 + $0x78] sm:$0xff]  }
 0x1d0   : > { %v601_v10 = vadd.f32 %v600_v9, %v2517_v26  ;;  %v632_v0 = vmax.f32 %v597_v6, 0.0  ;;  %1718 = vmatprep.subr.bf16.mxu0 %v1949_v25  ;;  %1775 = vmatprep.subr.bf16.mxu1 %v1949_v25  ;;  %v683_v26 = vld [vmem:[%s2698_s4] sm:$0x3] }
 0x1d1   : > { %v633_v12 = vmax.f32 %v599_v8, 0.0  ;;  %1719 = vmatpush3.bf16.msra.mxu0 %v1950_v23  ;;  %1783 = vmatpush3.bf16.msra.mxu1 %v1950_v23  ;;  %v2562_v27 = vrot.slane %v683_v26, %v402_v22  ;;  %v2566_v28 = vrot.slane %v683_v26, %v406_v24 }
 0x1d2   : > { %v634_v13 = vmax.f32 %v601_v10, 0.0 }
 0x1d3   : > { %v649_v14 = vpack.c.bf16 %v633_v12, %v631_v11 }
 0x1d4   : > { %v650_v15 = vpack.c.bf16 %v634_v13, %v632_v0 }
 0x1d6   : > { %957 = vmatprep.mubr.bf16.mxu1 %v650_v15 }
 0x1d7   : > { %958 = vmatmul.mubr.bf16.gmra.mrb[28].mxu1 %v649_v14 }
 0x272   : > { %v889_v29 = vpop.f32.mrb[0].mxu1 }
 0x273   : > { %v890_v30 = vadd.f32 %v889_v29, %v2562_v27  ;;  %v891_v31 = vpop.f32.mrb[1].mxu1 }
 0x274   : > { %v892_v32 = vadd.f32 %v891_v31, %v2566_v28  ;;  %v893_v18 = vpop.f32.mrb[2].mxu1 }
 0x275   : > { %v894_v33 = vadd.f32 %v893_v18, %v2562_v27  ;;  %v895_v19 = vpop.f32.mrb[3].mxu1  ;;  %v968_v35 = vmax.f32 %v890_v30, 0.0 }
 0x276   : > { %v896_v34 = vadd.f32 %v895_v19, %v2566_v28  ;;  %v969_v22 = vmax.f32 %v892_v32, 0.0 }
 0x277   : > { %v970_v36 = vmax.f32 %v894_v33, 0.0 }
 0x278   : > { %v971_v37 = vmax.f32 %v896_v34, 0.0 }
 0x279   : > { %v1000_v38 = vpack.c.bf16 %v970_v36, %v968_v35 }
 0x27a   : > { %v1001_v21 = vpack.c.bf16 %v971_v37, %v969_v22  ;;  %v899_v24 = vpop.f32.mrb[4].mxu1 }
 0x27b   : > { %v900_v39 = vadd.f32 %v899_v24, %v2562_v27  ;;  %v901_v40 = vpop.f32.mrb[5].mxu1 }
 0x27c   : > { %v902_v41 = vadd.f32 %v901_v40, %v2566_v28  ;;  %v903_v42 = vpop.f32.mrb[6].mxu1  ;;  %1183 = vmatprep.mubr.bf16.mxu0 %v1001_v21 }
 0x27d   : > { %v904_v43 = vadd.f32 %v903_v42, %v2562_v27  ;;  %v905_v44 = vpop.f32.mrb[7].mxu1  ;;  %1184 = vmatmul.mubr.bf16.vlgmr.msra.gmra.mrb[32].mxu0 %v1000_v38  ;;  %v972_v46 = vmax.f32 %v900_v39, 0.0 }
 0x27e   : > { %v906_v45 = vadd.f32 %v905_v44, %v2566_v28  ;;  %v973_v48 = vmax.f32 %v902_v41, 0.0 }
 0x27f   : > { %v974_v47 = vmax.f32 %v904_v43, 0.0 }
 0x280   : > { %v975_v49 = vmax.f32 %v906_v45, 0.0 }
 0x281   : > { %v1002_v50 = vpack.c.bf16 %v974_v47, %v972_v46 }
 0x282   : > { %v1003_v51 = vpack.c.bf16 %v975_v49, %v973_v48  ;;  %v909_v52 = vpop.f32.mrb[8].mxu1 }
 0x283   : > { %v910_v53 = vadd.f32 %v909_v52, %v2562_v27  ;;  %v911_v54 = vpop.f32.mrb[9].mxu1 }
 0x284   : > { %v912_v55 = vadd.f32 %v911_v54, %v2566_v28  ;;  %v913_v56 = vpop.f32.mrb[10].mxu1  ;;  %1191 = vmatprep.mubr.bf16.mxu0 %v1003_v51 }
 0x285   : > { %v914_v57 = vadd.f32 %v913_v56, %v2562_v27  ;;  %v915_v58 = vpop.f32.mrb[11].mxu1  ;;  %1192 = vmatmul.mubr.bf16.gmra.mrb[36].mxu0 %v1002_v50  ;;  %v976_v60 = vmax.f32 %v910_v53, 0.0 }
 0x286   : > { %v916_v59 = vadd.f32 %v915_v58, %v2566_v28  ;;  %v977_v62 = vmax.f32 %v912_v55, 0.0 }
 0x287   : > { %v978_v61 = vmax.f32 %v914_v57, 0.0 }
 0x288   : > { %v979_v63 = vmax.f32 %v916_v59, 0.0 }
 0x289   : > { %v1004_v1 = vpack.c.bf16 %v978_v61, %v976_v60 }
 0x28a   : > { %v1005_v2 = vpack.c.bf16 %v979_v63, %v977_v62  ;;  %v919_v3 = vpop.f32.mrb[12].mxu1 }
 0x28b   : > { %v920_v4 = vadd.f32 %v919_v3, %v2562_v27  ;;  %v921_v5 = vpop.f32.mrb[13].mxu1 }
 0x28c   : > { %v922_v6 = vadd.f32 %v921_v5, %v2566_v28  ;;  %v923_v7 = vpop.f32.mrb[14].mxu1  ;;  %1199 = vmatprep.mubr.bf16.mxu0 %v1005_v2 }
 0x28d   : > { %v924_v8 = vadd.f32 %v923_v7, %v2562_v27  ;;  %v925_v9 = vpop.f32.mrb[15].mxu1  ;;  %1200 = vmatmul.mubr.bf16.gmra.mrb[40].mxu0 %v1004_v1  ;;  %v980_v11 = vmax.f32 %v920_v4, 0.0 }
 0x28e   : > { %v926_v10 = vadd.f32 %v925_v9, %v2566_v28  ;;  %v981_v0 = vmax.f32 %v922_v6, 0.0 }
 0x28f   : > { %v982_v12 = vmax.f32 %v924_v8, 0.0 }
 0x290   : > { %v983_v13 = vmax.f32 %v926_v10, 0.0 }
 0x291   : > { %v1006_v14 = vpack.c.bf16 %v982_v12, %v980_v11  ;;  %v2603_v12 = vld [vmem:[%s2700_s6] ss:$0 sm:$0xff] }
 0x292   : > { %v1007_v15 = vpack.c.bf16 %v983_v13, %v981_v0  ;;  %v929_v16 = vpop.f32.mrb[16].mxu1 }
 0x293   : > { %v930_v20 = vadd.f32 %v929_v16, %v2562_v27  ;;  %v931_v17 = vpop.f32.mrb[17].mxu1 }
 0x294   : > { %v932_v25 = vadd.f32 %v931_v17, %v2566_v28  ;;  %v933_v23 = vpop.f32.mrb[18].mxu1  ;;  %1207 = vmatprep.mubr.bf16.mxu0 %v1007_v15 }
 0x295   : > { %v934_v26 = vadd.f32 %v933_v23, %v2562_v27  ;;  %v935_v29 = vpop.f32.mrb[19].mxu1  ;;  %1208 = vmatmul.mubr.bf16.gmra.mrb[44].mxu0 %v1006_v14  ;;  %v984_v31 = vmax.f32 %v930_v20, 0.0 }
 0x296   : > { %v936_v30 = vadd.f32 %v935_v29, %v2566_v28  ;;  %v985_v18 = vmax.f32 %v932_v25, 0.0 }
 0x297   : > { %v986_v32 = vmax.f32 %v934_v26, 0.0 }
 0x298   : > { %v987_v33 = vmax.f32 %v936_v30, 0.0 }
 0x299   : > { %v1008_v19 = vpack.c.bf16 %v986_v32, %v984_v31 }
 0x29a   : > { %v1009_v34 = vpack.c.bf16 %v987_v33, %v985_v18  ;;  %v939_v35 = vpop.f32.mrb[20].mxu1 }
 0x29b   : > { %v940_v36 = vadd.f32 %v939_v35, %v2562_v27  ;;  %v941_v22 = vpop.f32.mrb[21].mxu1 }
 0x29c   : > { %v942_v37 = vadd.f32 %v941_v22, %v2566_v28  ;;  %v943_v38 = vpop.f32.mrb[22].mxu1  ;;  %1215 = vmatprep.mubr.bf16.mxu0 %v1009_v34 }
 0x29d   : > { %v944_v21 = vadd.f32 %v943_v38, %v2562_v27  ;;  %v945_v24 = vpop.f32.mrb[23].mxu1  ;;  %1216 = vmatmul.mubr.bf16.gmra.mrb[48].mxu0 %v1008_v19  ;;  %v988_v40 = vmax.f32 %v940_v36, 0.0 }
 0x29e   : > { %v946_v39 = vadd.f32 %v945_v24, %v2566_v28  ;;  %v989_v42 = vmax.f32 %v942_v37, 0.0 }
 0x29f   : > { %v990_v41 = vmax.f32 %v944_v21, 0.0 }
 0x2a0   : > { %v991_v43 = vmax.f32 %v946_v39, 0.0 }
 0x2a1   : > { %v1010_v44 = vpack.c.bf16 %v990_v41, %v988_v40 }
 0x2a2   : > { %v1011_v45 = vpack.c.bf16 %v991_v43, %v989_v42  ;;  %v949_v46 = vpop.f32.mrb[24].mxu1 }
 0x2a3   : > { %v950_v47 = vadd.f32 %v949_v46, %v2562_v27  ;;  %v951_v48 = vpop.f32.mrb[25].mxu1 }
 0x2a4   : > { %v952_v49 = vadd.f32 %v951_v48, %v2566_v28  ;;  %v953_v50 = vpop.f32.mrb[26].mxu1  ;;  %1223 = vmatprep.mubr.bf16.mxu0 %v1011_v45 }
 0x2a5   : > { %v954_v51 = vadd.f32 %v953_v50, %v2562_v27  ;;  %v955_v52 = vpop.f32.mrb[27].mxu1  ;;  %1224 = vmatmul.mubr.bf16.gmra.mrb[52].mxu0 %v1010_v44  ;;  %v992_v54 = vmax.f32 %v950_v47, 0.0 }
 0x2a6   : > { %v956_v53 = vadd.f32 %v955_v52, %v2566_v28  ;;  %v993_v56 = vmax.f32 %v952_v49, 0.0 }
 0x2a7   : > { %v994_v55 = vmax.f32 %v954_v51, 0.0 }
 0x2a8   : > { %v995_v57 = vmax.f32 %v956_v53, 0.0 }
 0x2a9   : > { %v1012_v58 = vpack.c.bf16 %v994_v55, %v992_v54 }
 0x2aa   : > { %v1013_v59 = vpack.c.bf16 %v995_v57, %v993_v56  ;;  %v959_v60 = vpop.f32.mrb[28].mxu1 }
 0x2ab   : > { %v960_v61 = vadd.f32 %v959_v60, %v2562_v27  ;;  %v961_v62 = vpop.f32.mrb[29].mxu1 }
 0x2ac   : > { %v962_v63 = vadd.f32 %v961_v62, %v2566_v28  ;;  %v963_v1 = vpop.f32.mrb[30].mxu1  ;;  %1231 = vmatprep.mubr.bf16.mxu1 %v1013_v59 }
 0x2ad   : > { %v964_v2 = vadd.f32 %v963_v1, %v2562_v27  ;;  %v965_v3 = vpop.f32.mrb[31].mxu1  ;;  %1232 = vmatmul.mubr.bf16.vlgmr.msra.gmra.mrb[32].mxu1 %v1012_v58  ;;  %v996_v5 = vmax.f32 %v960_v61, 0.0 }
 0x2ae   : > { %v966_v4 = vadd.f32 %v965_v3, %v2566_v28  ;;  %v997_v7 = vmax.f32 %v962_v63, 0.0 }
 0x2af   : > { %v998_v6 = vmax.f32 %v964_v2, 0.0 }
 0x2b0   : > { %v999_v8 = vmax.f32 %v966_v4, 0.0 }
 0x2b1   : > { %v1014_v9 = vpack.c.bf16 %v998_v6, %v996_v5 }
 0x2b2   : > { %v1015_v10 = vpack.c.bf16 %v999_v8, %v997_v7 }
 0x2b4   : > { %1239 = vmatprep.mubr.bf16.mxu1 %v1015_v10 }
 0x2b5   : > { %1240 = vmatmul.mubr.bf16.gmra.mrb[36].mxu1 %v1014_v9 }
 0x350   : > { %v1720_v11 = vpop.f32.mrb[32].mxu0 }
 0x351   : > { %v1721_v0 = vpop.f32.mrb[33].mxu0 }
 0x352   : > { %v1722_v27 = vadd.f32 %v1721_v0, %v1720_v11  ;;  %v1723_v13 = vpop.f32.mrb[34].mxu0 }
 0x353   : > { %v1724_v14 = vpop.f32.mrb[35].mxu0 }
 0x354   : > { %v1186_v28 = vadd.f32 %v1722_v27, %v2603_v12  ;;  %v1725_v15 = vadd.f32 %v1724_v14, %v1723_v13 }
 0x356   : > { %v1248_v16 = vsub.f32 0.0, %v1186_v28  ;;  %v1189_v20 = vadd.f32 %v1725_v15, %v2603_v12 }
 0x358   : > { %v1264_v17 = vmul.f32 1.442695, %v1248_v16  ;;  %v1249_v25 = vsub.f32 0.0, %v1189_v20  ;;  %v1726_v23 = vpop.f32.mrb[36].mxu0 }
 0x359   : > { %v1727_v26 = vpop.f32.mrb[37].mxu0 }
 0x35a   : > { %1951 = vpow2.f32 %v1264_v17  ;;  %v1266_v29 = vmul.f32 1.442695, %v1249_v25  ;;  %v1728_v30 = vadd.f32 %v1727_v26, %v1726_v23  ;;  %v1729_v31 = vpop.f32.mrb[38].mxu0 }
 0x35b   : > { %v1730_v32 = vpop.f32.mrb[39].mxu0 }
 0x35c   : > { %1953 = vpow2.f32 %v1266_v29  ;;  %v1194_v18 = vadd.f32 %v1728_v30, %v2603_v12  ;;  %v1731_v33 = vadd.f32 %v1730_v32, %v1729_v31 }
 0x35e   : > { %v1250_v19 = vsub.f32 0.0, %v1194_v18  ;;  %v1197_v34 = vadd.f32 %v1731_v33, %v2603_v12 }
 0x360   : > { %v1268_v35 = vmul.f32 1.442695, %v1250_v19  ;;  %v1251_v36 = vsub.f32 0.0, %v1197_v34  ;;  %v1732_v22 = vpop.f32.mrb[40].mxu0 }
 0x361   : > { %v1733_v37 = vpop.f32.mrb[41].mxu0 }
 0x362   : > { %1955 = vpow2.f32 %v1268_v35  ;;  %v1270_v38 = vmul.f32 1.442695, %v1251_v36  ;;  %v1734_v21 = vadd.f32 %v1733_v37, %v1732_v22  ;;  %v1735_v24 = vpop.f32.mrb[42].mxu0 }
 0x363   : > { %v1736_v39 = vpop.f32.mrb[43].mxu0 }
 0x364   : > { %v1952_v40 = vpop.eup %1951  ;;  %1957 = vpow2.f32 %v1270_v38  ;;  %v1202_v41 = vadd.f32 %v1734_v21, %v2603_v12  ;;  %v1737_v42 = vadd.f32 %v1736_v39, %v1735_v24 }
 0x365   : > { %v1296_v43 = vadd.f32 1.0, %v1952_v40 }
 0x366   : > { %v1954_v44 = vpop.eup %1953  ;;  %v1252_v45 = vsub.f32 0.0, %v1202_v41  ;;  %v1205_v46 = vadd.f32 %v1737_v42, %v2603_v12 }
 0x367   : > { %v1297_v47 = vadd.f32 1.0, %v1954_v44  ;;  %1959 = vrcp.f32 %v1296_v43 }
 0x368   : > { %v1272_v48 = vmul.f32 1.442695, %v1252_v45  ;;  %v1253_v49 = vsub.f32 0.0, %v1205_v46  ;;  %v1738_v50 = vpop.f32.mrb[44].mxu0 }
 0x369   : > { %1961 = vrcp.f32 %v1297_v47  ;;  %v1739_v51 = vpop.f32.mrb[45].mxu0 }
 0x36a   : > { %1963 = vpow2.f32 %v1272_v48  ;;  %v1274_v52 = vmul.f32 1.442695, %v1253_v49  ;;  %v1740_v53 = vadd.f32 %v1739_v51, %v1738_v50  ;;  %v1741_v54 = vpop.f32.mrb[46].mxu0 }
 0x36b   : > { %v1742_v55 = vpop.f32.mrb[47].mxu0 }
 0x36c   : > { %v1956_v56 = vpop.eup %1955  ;;  %1965 = vpow2.f32 %v1274_v52  ;;  %v1210_v57 = vadd.f32 %v1740_v53, %v2603_v12  ;;  %v1743_v58 = vadd.f32 %v1742_v55, %v1741_v54 }
 0x36d   : > { %v1298_v59 = vadd.f32 1.0, %v1956_v56 }
 0x36e   : > { %v1958_v60 = vpop.eup %1957  ;;  %v1254_v61 = vsub.f32 0.0, %v1210_v57  ;;  %v1213_v62 = vadd.f32 %v1743_v58, %v2603_v12 }
 0x36f   : > { %v1299_v63 = vadd.f32 1.0, %v1958_v60  ;;  %1967 = vrcp.f32 %v1298_v59 }
 0x370   : > { %v1276_v1 = vmul.f32 1.442695, %v1254_v61  ;;  %v1255_v2 = vsub.f32 0.0, %v1213_v62  ;;  %v1744_v3 = vpop.f32.mrb[48].mxu0 }
 0x371   : > { %1969 = vrcp.f32 %v1299_v63  ;;  %v1745_v4 = vpop.f32.mrb[49].mxu0  ;;  %v1960_v5 = vpop.eup %1959 }
 0x372   : > { %1971 = vpow2.f32 %v1276_v1  ;;  %v1278_v6 = vmul.f32 1.442695, %v1255_v2  ;;  %v1746_v7 = vadd.f32 %v1745_v4, %v1744_v3  ;;  %v1747_v8 = vpop.f32.mrb[50].mxu0 }
 0x373   : > { %v1962_v9 = vpop.eup %1961  ;;  %v1748_v10 = vpop.f32.mrb[51].mxu0 }
 0x374   : > { %v1964_v11 = vpop.eup %1963  ;;  %v1660_v0 = vpack.c.bf16 %v1962_v9, %v1960_v5  ;;  %1973 = vpow2.f32 %v1278_v6  ;;  %v1218_v27 = vadd.f32 %v1746_v7, %v2603_v12  ;;  %v1749_v13 = vadd.f32 %v1748_v10, %v1747_v8 }
 0x375   : > { %v1300_v14 = vadd.f32 1.0, %v1964_v11 }
 0x376   : > { %v1966_v28 = vpop.eup %1965  ;;  %1661 = vst [vmem:[%s2615_s9] sm:$0xff] %v1660_v0   ;;  %v1256_v15 = vsub.f32 0.0, %v1218_v27  ;;  %v1221_v16 = vadd.f32 %v1749_v13, %v2603_v12 }
 0x377   : > { %v1301_v20 = vadd.f32 1.0, %v1966_v28  ;;  %1975 = vrcp.f32 %v1300_v14 }
 0x378   : > { %v1280_v17 = vmul.f32 1.442695, %v1256_v15  ;;  %v1257_v25 = vsub.f32 0.0, %v1221_v16  ;;  %v1750_v23 = vpop.f32.mrb[52].mxu0 }
 0x379   : > { %1977 = vrcp.f32 %v1301_v20  ;;  %v1751_v26 = vpop.f32.mrb[53].mxu0  ;;  %v1968_v29 = vpop.eup %1967 }
 0x37a   : > { %1979 = vpow2.f32 %v1280_v17  ;;  %v1282_v30 = vmul.f32 1.442695, %v1257_v25  ;;  %v1752_v31 = vadd.f32 %v1751_v26, %v1750_v23  ;;  %v1753_v32 = vpop.f32.mrb[54].mxu0 }
 0x37b   : > { %v1970_v18 = vpop.eup %1969  ;;  %v1754_v33 = vpop.f32.mrb[55].mxu0 }
 0x37c   : > { %v1972_v19 = vpop.eup %1971  ;;  %v1665_v34 = vpack.c.bf16 %v1970_v18, %v1968_v29  ;;  %1981 = vpow2.f32 %v1282_v30  ;;  %v1226_v35 = vadd.f32 %v1752_v31, %v2603_v12  ;;  %v1755_v36 = vadd.f32 %v1754_v33, %v1753_v32 }
 0x37d   : > { %v1302_v22 = vadd.f32 1.0, %v1972_v19 }
 0x37e   : > { %v1974_v37 = vpop.eup %1973  ;;  %1697 = vst [vmem:[%s2615_s9 + $0x8] sm:$0xff] %v1665_v34   ;;  %v1258_v38 = vsub.f32 0.0, %v1226_v35  ;;  %v1229_v21 = vadd.f32 %v1755_v36, %v2603_v12 }
 0x37f   : > { %v1303_v24 = vadd.f32 1.0, %v1974_v37  ;;  %1983 = vrcp.f32 %v1302_v22 }
 0x380   : > { %v1284_v39 = vmul.f32 1.442695, %v1258_v38  ;;  %v1259_v40 = vsub.f32 0.0, %v1229_v21  ;;  %v1756_v41 = vpop.f32.mrb[32].mxu1 }
 0x381   : > { %1985 = vrcp.f32 %v1303_v24  ;;  %v1757_v42 = vpop.f32.mrb[33].mxu1  ;;  %v1976_v43 = vpop.eup %1975 }
 0x382   : > { %1987 = vpow2.f32 %v1284_v39  ;;  %v1286_v44 = vmul.f32 1.442695, %v1259_v40  ;;  %v1758_v45 = vadd.f32 %v1757_v42, %v1756_v41  ;;  %v1759_v46 = vpop.f32.mrb[34].mxu1 }
 0x383   : > { %v1978_v47 = vpop.eup %1977  ;;  %v1760_v48 = vpop.f32.mrb[35].mxu1 }
 0x384   : > { %v1980_v49 = vpop.eup %1979  ;;  %v1670_v50 = vpack.c.bf16 %v1978_v47, %v1976_v43  ;;  %1989 = vpow2.f32 %v1286_v44  ;;  %v1234_v51 = vadd.f32 %v1758_v45, %v2603_v12  ;;  %v1761_v52 = vadd.f32 %v1760_v48, %v1759_v46 }
 0x385   : > { %v1304_v53 = vadd.f32 1.0, %v1980_v49 }
 0x386   : > { %v1982_v54 = vpop.eup %1981  ;;  %1698 = vst [vmem:[%s2615_s9 + $0x10] sm:$0xff] %v1670_v50   ;;  %v1260_v55 = vsub.f32 0.0, %v1234_v51  ;;  %v1237_v56 = vadd.f32 %v1761_v52, %v2603_v12 }
 0x387   : > { %v1305_v57 = vadd.f32 1.0, %v1982_v54  ;;  %1991 = vrcp.f32 %v1304_v53 }
 0x388   : > { %v1288_v58 = vmul.f32 1.442695, %v1260_v55  ;;  %v1261_v59 = vsub.f32 0.0, %v1237_v56  ;;  %v1762_v60 = vpop.f32.mrb[36].mxu1 }
 0x389   : > { %1993 = vrcp.f32 %v1305_v57  ;;  %v1763_v61 = vpop.f32.mrb[37].mxu1  ;;  %v1984_v62 = vpop.eup %1983 }
 0x38a   : > { %1995 = vpow2.f32 %v1288_v58  ;;  %v1290_v63 = vmul.f32 1.442695, %v1261_v59  ;;  %v1764_v1 = vadd.f32 %v1763_v61, %v1762_v60  ;;  %v1765_v2 = vpop.f32.mrb[38].mxu1 }
 0x38b   : > { %v1986_v3 = vpop.eup %1985  ;;  %v1766_v4 = vpop.f32.mrb[39].mxu1 }
 0x38c   : > { %v1988_v5 = vpop.eup %1987  ;;  %v1675_v6 = vpack.c.bf16 %v1986_v3, %v1984_v62  ;;  %1997 = vpow2.f32 %v1290_v63  ;;  %v1242_v7 = vadd.f32 %v1764_v1, %v2603_v12  ;;  %v1767_v8 = vadd.f32 %v1766_v4, %v1765_v2 }
 0x38d   : > { %v1306_v9 = vadd.f32 1.0, %v1988_v5 }
 0x38e   : > { %v1990_v10 = vpop.eup %1989  ;;  %1699 = vst [vmem:[%s2615_s9 + $0x18] sm:$0xff] %v1675_v6   ;;  %v1262_v11 = vsub.f32 0.0, %v1242_v7  ;;  %v1245_v0 = vadd.f32 %v1767_v8, %v2603_v12 }
 0x38f   : > { %v1307_v27 = vadd.f32 1.0, %v1990_v10  ;;  %1999 = vrcp.f32 %v1306_v9 }
 0x390   : > { %v1292_v13 = vmul.f32 1.442695, %v1262_v11  ;;  %v1263_v14 = vsub.f32 0.0, %v1245_v0 }
 0x391   : > { %2001 = vrcp.f32 %v1307_v27  ;;  %v1992_v28 = vpop.eup %1991 }
 0x392   : > { %2003 = vpow2.f32 %v1292_v13  ;;  %v1294_v15 = vmul.f32 1.442695, %v1263_v14 }
 0x393   : > { %v1994_v16 = vpop.eup %1993 }
 0x394   : > { %v1996_v20 = vpop.eup %1995  ;;  %v1680_v17 = vpack.c.bf16 %v1994_v16, %v1992_v28  ;;  %2005 = vpow2.f32 %v1294_v15 }
 0x395   : > { %v1308_v25 = vadd.f32 1.0, %v1996_v20 }
 0x396   : > { %v1998_v23 = vpop.eup %1997  ;;  %1700 = vst [vmem:[%s2615_s9 + $0x20] sm:$0xff] %v1680_v17  }
 0x397   : > { %v1309_v26 = vadd.f32 1.0, %v1998_v23  ;;  %2007 = vrcp.f32 %v1308_v25 }
 0x399   : > { %2009 = vrcp.f32 %v1309_v26  ;;  %v2000_v12 = vpop.eup %1999 }
 0x39b   : > { %v2002_v29 = vpop.eup %2001 }
 0x39c   : > { %v2004_v30 = vpop.eup %2003  ;;  %v1685_v31 = vpack.c.bf16 %v2002_v29, %v2000_v12 }
 0x39d   : > { %v1310_v32 = vadd.f32 1.0, %v2004_v30 }
 0x39e   : > { %v2006_v18 = vpop.eup %2005  ;;  %1701 = vst [vmem:[%s2615_s9 + $0x28] sm:$0xff] %v1685_v31  }
 0x39f   : > { %v1311_v33 = vadd.f32 1.0, %v2006_v18  ;;  %2011 = vrcp.f32 %v1310_v32 }
 0x3a1   : > { %2013 = vrcp.f32 %v1311_v33  ;;  %v2008_v19 = vpop.eup %2007 }
 0x3a3   : > { %v2010_v34 = vpop.eup %2009 }
 0x3a4   : > { %v1690_v35 = vpack.c.bf16 %v2010_v34, %v2008_v19 }
 0x3a6   : > { %1702 = vst [vmem:[%s2615_s9 + $0x30] sm:$0xff] %v1690_v35  }
 0x3a8   : > { %1415 = sbr.rel (!%p2729_p10) target bundleno = 971 (0x3cb), region = 68 }
 0x3a9   : > { %v2012_v36 = vpop.eup %2011 }
 0x3ab   : > { %v2014_v22 = vpop.eup %2013 }
 0x3ac   : > { %v1695_v37 = vpack.c.bf16 %v2014_v22, %v2012_v36 }
 0x3ae   : > { %1703 = vst [vmem:[%s2615_s9 + $0x38] sm:$0xff] %v1695_v37  }
 0x3af   : > { %s2741_s8 = smov (!%p1418_p1, %s1417_s8), 16 }
 0x3b0   : > { %s2636_s18 = sshll.u32 %s2741_s8, 6 }
 0x3b1   : > { %s1422_s14 = ssub.s32 1024, %s2636_s18 }
 0x3b2   : > { %1423 = vsyncadd %s1409_s30, %s1422_s14  ;;  %p1633_p4 = scmp.ne.s32.totalorder %s2636_s18, 0  ;;  %s1656_s13 = sshll.u32 %s2278_s28, 10 }
 0x3b3   : > { %s2646_s22 = scalar_lea.hbm %s2701_s7, %s1656_s13  ;;  %s1428_s29 = sshll.u32 %s2615_s9, 4  ;;  %s2649_s29 = int_to_ptr.vmem [resolvable:$true] %s1428_s29 }
 0x3b4   : > { %s2127_s24 = scalar_lea.vmem %s2649_s29, %s2636_s18  ;;  %s2214_s12 = smov [#allocation10]  }
 0x3b5   : > { %p2128_p6 = scmp.ne.s32.totalorder %s2649_s29, %s2127_s24  ;;  %s2131_s15 = sshll.u32 %s2214_s12, 4  ;;  %s2132_s15 = int_to_ptr.vmem [resolvable:$false] %s2131_s15 }
 0x3b6   : > { %s2133_s28 = scalar_lea.vmem %s2132_s15, 2048  ;;  %p2134_p11 = scmp.lt.s32.totalorder %s2649_s29, %s2132_s15 }
 0x3b7   : > { %p2129_p3 = pnand %p2128_p6, %p1633_p4  ;;  %p2135_p13 = scmp.lt.s32.totalorder %s2133_s28, %s2127_s24 }
 0x3b9   : > { %p2130_p5 = pneg %p2129_p3  ;;  %p2136_p12 = por %p2135_p13, %p2134_p11 }
 0x3bb   : > { %p2137_p0 = pnand %p2136_p12, %p2130_p5 }
 0x3bd   : > { %2140 = shalt.err (!%p2137_p0)
}
 0x3be   : > { %s2141_s23 = scalar_lea.hbm %s2646_s22, %s2636_s18  ;;  %s2145_s20 = scalar_lea.hbm %s2701_s7, 4032 }
 0x3bf   : > { %p2142_p2 = scmp.ne.s32.totalorder %s2646_s22, %s2141_s23  ;;  %p2146_p9 = scmp.lt.u32.totalorder %s2646_s22, %s2701_s7 }
 0x3c0   : > { %p2147_p10 = scmp.lt.u32.totalorder %s2145_s20, %s2141_s23  ;;  %p2149_p6 = scmp.lt.u32.totalorder %s2141_s23, %s2646_s22 }
 0x3c1   : > { %p2143_p7 = pnand %p2142_p2, %p1633_p4 }
 0x3c2   : > { %p2148_p1 = por %p2147_p10, %p2146_p9 }
 0x3c3   : > { %p2144_p8 = pneg %p2143_p7 }
 0x3c4   : > { %p2150_p3 = por %p2149_p6, %p2148_p1 }
 0x3c6   : > { %p2151_p5 = pnand %p2150_p3, %p2144_p8 }
 0x3c8   : > { %2154 = shalt.err (!%p2151_p5)
}
 0x3c9   : > { %s2215_s10 = smov 64   ;;  %s2216_s8 = smov 4  }
 0x3ca   : > { %1434 = dma.vmem_to_hbm [thread:$0]  (%p1633_p4), %s2649_s29, %s2636_s18, %s2646_s22, %s1409_s30, %s2215_s10, %s2215_s10, %s2216_s8  }
 0x3cb PF: > { %s2730_s14 = sld [smem:[#allocation15_spill]]  ;;  %s2731_s13 = sld [smem:[#allocation18_spill]] }
 0x3cc   : > { %p1818_p11 = scmp.ge.s32.totalorder %s2201_s27, 2 }
 0x3d1   : > { %s1443_s11 = sand.u32 1, %s2730_s14   ;;  %p2732_p13 = scmp.ne.s32.totalorder %s2731_s13, 0 }
 0x3d2   : > { %s1444_s19 = scalar_lea.sflag [#allocation4], %s1443_s11 }
 0x3d3   : > { %p1809_p12 = pnand %p1818_p11, %p2732_p13 }
 0x3d5   : > { %2184 = dma.done.wait (!%p1809_p12), %s1444_s19, 1024  }
 0x3d6   : > { %2186 = vsyncadd (!%p1809_p12), %s1444_s19, 4294966272  ;;  %s2733_s27 = sld [smem:[#allocation16_spill]]  ;;  %s2734_s12 = sld [smem:[#allocation17_spill]] }
 0x3d7   : > { %s2735_s24 = smov %s2193_s25  ;;  %s2736_s25 = smov %s2197_s26 }
 0x3dc   : > { %p22_p0 = scmp.ge.s32.totalorder %s2733_s27, 6   ;;  %s2737_s26 = smov %s2734_s12 }
 0x3de   :  { %24 = sbr.rel (!%p22_p0) target bundleno = 9 (0x9), region = 105 }
 0x3e5   :  { %1449 = vsyncpa [#allocation3], 1 }
 0x3e6   :  { %1451 = vsyncpa [#allocation3 + $0x1], 1 }
 0x3e7   :  { %1452 = vsyncpa [#allocation6], 1 }
 0x3e8   :  { %1453 = vsyncpa [#allocation9], 1 }
 0x3e9   :  { %1454 = vsyncpa [#allocation4], 1 }
 0x3ea   :  { %1456 = vsyncpa [#allocation4 + $0x1], 1 }

</bundles_post_ra>
